<compile_context>
chip_gen: v7x
topology: tpu7x:2x2x1
jax: 0.10.0
libtpu: 0.0.40
codegen_flags: <defaults>
</compile_context>

<pallas_src>
import functools
import math

import jax
import jax.numpy as jnp
from jax.experimental import pallas as pl
from jax.experimental.pallas import tpu as pltpu


def _round_up(v, m):
    return (v + m - 1) // m * m


def encoder_kernel(xy_ref, avg_ref, w1_ref, wbig_ref, bias_ref, out_ref, *, h_size):
    """One grid step: full Encoder forward for a tb-row block of batch elements.

    xy_ref  : (tb*N, d_x+d_y+1) bf16  concat(x, y, 1); ones-column folds b1 in
    avg_ref : (tb, tb*N)        f32   block-diagonal 1/N averaging matrix
    w1_ref  : (d_x+d_y+1, P)    bf16  [W1; b1], output lanes zero-padded to P
    wbig_ref: (2, P, P)         bf16  [0] = W2 @ Wmap (fused), [1] = [Wmu | Wls]
    bias_ref: (2, P)            f32   [0] = b2 @ Wmap + bmap,  [1] = [bmu | bls]
    out_ref : (tb, P)           f32   lanes [:h]=mu, [h:2h]=sigma, rest padding
    """
    # MLP layer 1 (Linear + ReLU); bias comes from the ones-column of xy.
    h1 = jnp.dot(xy_ref[...], w1_ref[...], preferred_element_type=jnp.float32)
    h1 = jnp.maximum(h1, 0.0)                                          # (tb*N, P)

    # .mean(dim=1) over observations via the precomputed block-diagonal
    # averaging matmul (kept entirely in f32 so the reduction stays exact).
    # The mean is linear and there is no activation between MLP layer 2 and
    # _map's linear layer, so those two layers were pre-fused in the wrapper
    # and the mean is taken directly on h1.
    m = jnp.dot(avg_ref[...], h1, preferred_element_type=jnp.float32)  # (tb, P)

    # Fused (MLP layer 2 -> _map) Linear + ReLU.
    r = jnp.dot(m.astype(jnp.bfloat16), wbig_ref[0],
                preferred_element_type=jnp.float32) + bias_ref[0:1]
    r = jnp.maximum(r, 0.0)                                            # (tb, P)

    # Fused _mu | _log_sigma heads -> one lane-dense P-wide output slab.
    head = jnp.dot(r.astype(jnp.bfloat16), wbig_ref[1],
                   preferred_element_type=jnp.float32) + bias_ref[1:2]

    lane = jax.lax.broadcasted_iota(jnp.int32, (1, head.shape[-1]), 1)
    is_sigma = (lane >= h_size) & (lane < 2 * h_size)
    out_ref[...] = jnp.where(is_sigma, 0.1 + 0.9 * jax.nn.sigmoid(head), head)


def _num_tensorcores():
    # v7x has 2 TensorCores per chip; v5e/v6e have 1.
    try:
        kind = jax.devices()[0].device_kind.lower()
    except Exception:
        return 1
    return 2 if "v7" in kind else 1


def _choose_block_batch(B, N):
    """Pick the batch tile (always a multiple of 8).

    Single-TC chips (v5e/v6e): the grid is a serial loop, so run the whole
    (8-padded) batch in as few fat steps as possible (ideally one). Dual-TC
    v7x: keep >= 2 steps so the "parallel" batch axis shards across both
    TensorCores. In all cases cap tb so that the VMEM-resident (tb, tb*N)
    averaging matrix (quadratic in tb) plus double-buffered slabs stay well
    inside scoped VMEM on every generation (16 MiB default on v5e).
    """
    B8 = _round_up(B, 8)
    cap = int(math.sqrt((2 << 20) / (4.0 * max(N, 1)))) // 8 * 8
    cap = max(8, min(cap, 512))
    if _num_tensorcores() >= 2 and B8 > 8:
        tb = _round_up((B8 + 1) // 2, 8)       # at least two (even-sized) steps
    else:
        tb = B8                                # single TC: one fat step if it fits
    return max(8, min(tb, cap))


def encoder_forward(x, y, params, block_batch=None):
    """Returns (mu, sigma) of the Normal distribution over [B, h_size]."""
    (w1, b1), (w2, b2), (wmap, bmap), (wmu, bmu), (wls, bls) = params
    B, N, d_x = x.shape
    d_y = y.shape[-1]
    d_in = d_x + d_y + 1                       # +1: ones column folds b1 into W1
    H1 = w1.shape[1]
    h_size = wmu.shape[1]
    P = max(128, _round_up(H1, 128), _round_up(2 * h_size, 128))

    # ---- one-time weight preparation (outside the kernel) -------------------
    w1_aug = jnp.pad(jnp.concatenate([w1, b1], axis=0),
                     ((0, 0), (0, P - H1))).astype(jnp.bfloat16)       # (d_in, P)
    # Fuse MLP layer-2 and _map's linear layer (no activation in between; the
    # observation mean is linear so it commutes with both).
    w2m = w2 @ wmap                                                    # (H1, h)
    b2m = b2 @ wmap + bmap                                             # (1, h)
    whead = jnp.concatenate([wmu, wls], axis=1)                        # (h, 2h)
    bhead = jnp.concatenate([bmu, bls], axis=1)                        # (1, 2h)
    wbig = jnp.zeros((2, P, P), jnp.float32)
    wbig = wbig.at[0, :H1, :h_size].set(w2m)
    wbig = wbig.at[1, :h_size, :2 * h_size].set(whead)
    wbig = wbig.astype(jnp.bfloat16)
    bias = jnp.zeros((2, P), jnp.float32)
    bias = bias.at[0, :h_size].set(b2m[0])
    bias = bias.at[1, :2 * h_size].set(bhead[0])

    # ---- batch tiling --------------------------------------------------------
    tb = block_batch if block_batch is not None else _choose_block_batch(B, N)
    tb = _round_up(max(1, tb), 8)              # sublane-aligned tiles, no vst.msk
    B_pad = pl.cdiv(B, tb) * tb
    steps = B_pad // tb

    # concat(x, y, 1) once in the wrapper; stream as a single bf16 operand.
    ones = jnp.ones((B, N, 1), x.dtype)
    xy = jnp.concatenate([x, y, ones], axis=-1)
    if B_pad != B:
        xy = jnp.pad(xy, ((0, B_pad - B), (0, 0), (0, 0)))
    xy2 = xy.reshape(B_pad * N, d_in).astype(jnp.bfloat16)

    # Block-diagonal 1/N averaging matrix for .mean(dim=1), built once (f32).
    avg = jnp.repeat(jnp.eye(tb, dtype=jnp.float32), N, axis=1) / N    # (tb, tb*N)

    const_spec = lambda a: pl.BlockSpec(a.shape, lambda b, _nd=a.ndim: (0,) * _nd)

    # Advisory cost estimate + explicit VMEM budget.
    flops = (2 * B_pad * N * d_in * P            # layer 1
             + 2 * B_pad * (tb * N) * P          # averaging matmul
             + 2 * 2 * B_pad * P * P)            # fused layer2/map + heads
    bytes_accessed = (xy2.size * 2 + avg.size * 4 + w1_aug.size * 2
                      + wbig.size * 2 + bias.size * 4 + B_pad * P * 4)
    cost = pl.CostEstimate(flops=int(flops),
                           transcendentals=int(B_pad * P),
                           bytes_accessed=int(bytes_accessed))
    vmem_needed = (2 * tb * N * 128 * 2                     # xy slab (lane-padded), 2 bufs
                   + 2 * tb * _round_up(tb * N, 128) * 4    # averaging matrix
                   + 2 * _round_up(d_in, 8) * P * 2         # w1_aug
                   + 2 * 2 * P * P * 2                      # wbig
                   + 2 * 8 * P * 4                          # bias
                   + 2 * tb * P * 4                         # output slab
                   + (tb * N + 2 * tb) * P * 4)             # in-kernel temporaries
    vmem_limit = int(min(max(4 * vmem_needed, 16 << 20), 32 << 20))

    kernel = functools.partial(encoder_kernel, h_size=h_size)
    out = pl.pallas_call(
        kernel,
        out_shape=jax.ShapeDtypeStruct((B_pad, P), jnp.float32),
        grid_spec=pltpu.PrefetchScalarGridSpec(
            num_scalar_prefetch=0,
            grid=(steps,),
            in_specs=[
                pl.BlockSpec((tb * N, d_in), lambda b: (b, 0)),
                const_spec(avg),
                const_spec(w1_aug),
                const_spec(wbig),
                const_spec(bias),
            ],
            out_specs=pl.BlockSpec((tb, P), lambda b: (b, 0)),
        ),
        compiler_params=pltpu.CompilerParams(
            dimension_semantics=("parallel",),
            vmem_limit_bytes=vmem_limit),
        cost_estimate=cost,
    )(xy2, avg, w1_aug, wbig, bias)

    mu = out[:B, :h_size]
    sigma = out[:B, h_size:2 * h_size]
    return mu, sigma


def _linear_params(key, fan_in, fan_out):
    # PyTorch nn.Linear default init: U(-1/sqrt(fan_in), 1/sqrt(fan_in))
    kw, kb = jax.random.split(key)
    bound = 1.0 / jnp.sqrt(fan_in)
    w = jax.random.uniform(kw, (fan_in, fan_out), jnp.float32, -bound, bound)
    b = jax.random.uniform(kb, (1, fan_out), jnp.float32, -bound, bound)
    return w, b


def _reference_forward(x, y, params):
    # Pure f32 reference, structured exactly like the PyTorch module.
    (w1, b1), (w2, b2), (wmap, bmap), (wmu, bmu), (wls, bls) = params
    data = jnp.concatenate((x, y), axis=-1)
    h = jnp.maximum(data @ w1 + b1, 0.0)
    h = h @ w2 + b2
    r = jnp.mean(h, axis=1)
    r = jnp.maximum(r @ wmap + bmap, 0.0)
    mu = r @ wmu + bmu
    ls = r @ wls + bls
    sigma = 0.1 + 0.9 * jax.nn.sigmoid(ls)
    return mu, sigma


if __name__ == "__main__":
    # Small shapes consistent with the module: in_features=d_x, d_y=1.
    B, N, d_x, d_y = 2, 8, 3, 1
    out_features = (32, 32)
    h_size = 32

    key = jax.random.PRNGKey(0)
    k_x, k_y, k1, k2, k3, k4, k5 = jax.random.split(key, 7)

    x = jax.random.normal(k_x, (B, N, d_x), jnp.float32)
    y = jax.random.normal(k_y, (B, N, d_y), jnp.float32)

    params = (
        _linear_params(k1, d_x + d_y, out_features[0]),        # MLP layer 1
        _linear_params(k2, out_features[0], out_features[1]),  # MLP layer 2
        _linear_params(k3, out_features[1], h_size),           # _map
        _linear_params(k4, h_size, h_size),                    # _mu
        _linear_params(k5, h_size, h_size),                    # _log_sigma
    )

    # bf16 matmul operands with f32 accumulation -> compare against the pure
    # f32 reference with a correspondingly relaxed tolerance.
    TOL = dict(atol=2e-2, rtol=2e-2)

    # Single-step path (whole padded batch in one grid step).
    mu, sigma = encoder_forward(x, y, params)
    jax.block_until_ready((mu, sigma))
    mu_ref, sigma_ref = _reference_forward(x, y, params)
    assert mu.shape == (B, h_size) and sigma.shape == (B, h_size)
    assert jnp.allclose(mu, mu_ref, **TOL), "mu mismatch vs reference"
    assert jnp.allclose(sigma, sigma_ref, **TOL), "sigma mismatch vs reference"

    # Multi-step / padded-batch path (B not a multiple of the block size).
    B2 = 10
    k_x2, k_y2 = jax.random.split(jax.random.PRNGKey(1))
    x2 = jax.random.normal(k_x2, (B2, N, d_x), jnp.float32)
    y2 = jax.random.normal(k_y2, (B2, N, d_y), jnp.float32)
    mu2, sigma2 = encoder_forward(x2, y2, params, block_batch=8)
    jax.block_until_ready((mu2, sigma2))
    mu2_ref, sigma2_ref = _reference_forward(x2, y2, params)
    assert jnp.allclose(mu2, mu2_ref, **TOL), "mu mismatch (tiled path)"
    assert jnp.allclose(sigma2, sigma2_ref, **TOL), "sigma mismatch (tiled path)"

    print("KERNEL_OK")
</pallas_src>

<mosaic_0001>
module attributes {stable_mosaic.version = 11 : i64} {
  func.func @encoder_kernel(%arg0: i32, %arg1: memref<64x5xbf16, #tpu.memory_space<vmem>>, %arg2: memref<8x64xf32, #tpu.memory_space<vmem>>, %arg3: memref<5x128xbf16, #tpu.memory_space<vmem>>, %arg4: memref<2x128x128xbf16, #tpu.memory_space<vmem>>, %arg5: memref<2x128xf32, #tpu.memory_space<vmem>>, %arg6: memref<8x128xf32, #tpu.memory_space<vmem>>) attributes {dimension_semantics = [#tpu.dimension_semantics<parallel>], iteration_bounds = array<i64: 1>, scalar_prefetch = 0 : i64, scratch_operands = 0 : i64, tpu.core_type = #tpu.core_type<tc>, window_params = [{transform_indices = @transform_0, window_bounds = array<i64: 64, 5>}, {pipeline_mode = #tpu.pipeline_mode<synchronous>, transform_indices = @transform_1, window_bounds = array<i64: 8, 64>}, {pipeline_mode = #tpu.pipeline_mode<synchronous>, transform_indices = @transform_2, window_bounds = array<i64: 5, 128>}, {pipeline_mode = #tpu.pipeline_mode<synchronous>, transform_indices = @transform_3, window_bounds = array<i64: 2, 128, 128>}, {pipeline_mode = #tpu.pipeline_mode<synchronous>, transform_indices = @transform_4, window_bounds = array<i64: 2, 128>}, {transform_indices = @transform_5, window_bounds = array<i64: 8, 128>}]} {
    %c0 = arith.constant 0 : index
    %c0_0 = arith.constant 0 : index
    %0 = vector.load %arg1[%c0, %c0_0] : memref<64x5xbf16, #tpu.memory_space<vmem>>, vector<64x5xbf16>
    %c0_1 = arith.constant 0 : index
    %c0_2 = arith.constant 0 : index
    %1 = vector.load %arg3[%c0_1, %c0_2] : memref<5x128xbf16, #tpu.memory_space<vmem>>, vector<5x128xbf16>
    %cst = arith.constant dense<0.000000e+00> : vector<64x128xf32>
    %2 = tpu.matmul %0, %1, %cst {dimension_numbers = #tpu.dot_dimension_numbers<[1], [0], [0], [1], [0, 0, 1, 1], [], []>} : vector<64x5xbf16>, vector<5x128xbf16>, vector<64x128xf32> -> vector<64x128xf32>
    %cst_3 = arith.constant 0.000000e+00 : f32
    %3 = vector.broadcast %cst_3 : f32 to vector<64x128xf32>
    %4 = arith.maximumf %2, %3 : vector<64x128xf32>
    %c0_4 = arith.constant 0 : index
    %c0_5 = arith.constant 0 : index
    %5 = vector.load %arg2[%c0_4, %c0_5] : memref<8x64xf32, #tpu.memory_space<vmem>>, vector<8x64xf32>
    %cst_6 = arith.constant dense<0.000000e+00> : vector<8x128xf32>
    %6 = tpu.matmul %5, %4, %cst_6 {dimension_numbers = #tpu.dot_dimension_numbers<[1], [0], [0], [1], [0, 0, 1, 1], [], []>} : vector<8x64xf32>, vector<64x128xf32>, vector<8x128xf32> -> vector<8x128xf32>
    %7 = arith.truncf %6 : vector<8x128xf32> to vector<8x128xbf16>
    %c0_7 = arith.constant 0 : index
    %c0_8 = arith.constant 0 : index
    %c0_9 = arith.constant 0 : index
    %8 = vector.load %arg4[%c0_7, %c0_8, %c0_9] : memref<2x128x128xbf16, #tpu.memory_space<vmem>>, vector<1x128x128xbf16>
    %9 = vector.shape_cast %8 : vector<1x128x128xbf16> to vector<128x128xbf16>
    %cst_10 = arith.constant dense<0.000000e+00> : vector<8x128xf32>
    %10 = tpu.matmul %7, %9, %cst_10 {dimension_numbers = #tpu.dot_dimension_numbers<[1], [0], [0], [1], [0, 0, 1, 1], [], []>} : vector<8x128xbf16>, vector<128x128xbf16>, vector<8x128xf32> -> vector<8x128xf32>
    %c0_11 = arith.constant 0 : index
    %c0_12 = arith.constant 0 : index
    %11 = vector.load %arg5[%c0_11, %c0_12] : memref<2x128xf32, #tpu.memory_space<vmem>>, vector<1x128xf32>
    %12 = vector.broadcast %11 : vector<1x128xf32> to vector<8x128xf32>
    %13 = arith.addf %10, %12 : vector<8x128xf32>
    %cst_13 = arith.constant 0.000000e+00 : f32
    %14 = vector.broadcast %cst_13 : f32 to vector<8x128xf32>
    %15 = arith.maximumf %13, %14 : vector<8x128xf32>
    %16 = arith.truncf %15 : vector<8x128xf32> to vector<8x128xbf16>
    %c1 = arith.constant 1 : index
    %c0_14 = arith.constant 0 : index
    %c0_15 = arith.constant 0 : index
    %17 = vector.load %arg4[%c1, %c0_14, %c0_15] : memref<2x128x128xbf16, #tpu.memory_space<vmem>>, vector<1x128x128xbf16>
    %18 = vector.shape_cast %17 : vector<1x128x128xbf16> to vector<128x128xbf16>
    %cst_16 = arith.constant dense<0.000000e+00> : vector<8x128xf32>
    %19 = tpu.matmul %16, %18, %cst_16 {dimension_numbers = #tpu.dot_dimension_numbers<[1], [0], [0], [1], [0, 0, 1, 1], [], []>} : vector<8x128xbf16>, vector<128x128xbf16>, vector<8x128xf32> -> vector<8x128xf32>
    %c1_17 = arith.constant 1 : index
    %c0_18 = arith.constant 0 : index
    %20 = vector.load %arg5[%c1_17, %c0_18] : memref<2x128xf32, #tpu.memory_space<vmem>>, vector<1x128xf32>
    %21 = vector.broadcast %20 : vector<1x128xf32> to vector<8x128xf32>
    %22 = arith.addf %19, %21 : vector<8x128xf32>
    %23 = tpu.iota {dimensions = array<i32: 1>} : vector<1x128xi32>
    %c32_i32 = arith.constant 32 : i32
    %24 = vector.broadcast %c32_i32 : i32 to vector<1x128xi32>
    %25 = arith.cmpi sge, %23, %24 : vector<1x128xi32>
    %c64_i32 = arith.constant 64 : i32
    %26 = vector.broadcast %c64_i32 : i32 to vector<1x128xi32>
    %27 = arith.cmpi slt, %23, %26 : vector<1x128xi32>
    %28 = arith.andi %25, %27 : vector<1x128xi1>
    %29 = arith.negf %22 : vector<8x128xf32>
    %30 = math.exp %29 : vector<8x128xf32>
    %cst_19 = arith.constant 1.000000e+00 : f32
    %31 = vector.broadcast %cst_19 : f32 to vector<8x128xf32>
    %32 = arith.addf %31, %30 : vector<8x128xf32>
    %33 = arith.divf %31, %32 : vector<8x128xf32>
    %cst_20 = arith.constant 0.899999976 : f32
    %34 = vector.broadcast %cst_20 : f32 to vector<8x128xf32>
    %35 = arith.mulf %34, %33 : vector<8x128xf32>
    %cst_21 = arith.constant 1.000000e-01 : f32
    %36 = vector.broadcast %cst_21 : f32 to vector<8x128xf32>
    %37 = arith.addf %36, %35 : vector<8x128xf32>
    %38 = vector.shape_cast %28 : vector<1x128xi1> to vector<1x128xi1>
    %39 = vector.broadcast %38 : vector<1x128xi1> to vector<8x128xi1>
    %40 = arith.select %39, %37, %22 : vector<8x128xi1>, vector<8x128xf32>
    %c0_22 = arith.constant 0 : index
    %c0_23 = arith.constant 0 : index
    %41 = vector.load %arg6[%c0_22, %c0_23] : memref<8x128xf32, #tpu.memory_space<vmem>>, vector<8x128xf32>
    tpu.vector_store %arg6[%c0_22, %c0_23], %40 {strides = array<i32>} : memref<8x128xf32, #tpu.memory_space<vmem>>, vector<8x128xf32>,
    return
  }
  func.func @transform_0(%arg0: i32) -> (i32, i32) {
    %c0_i32 = arith.constant 0 : i32
    %c0_i32_0 = arith.constant 0 : i32
    return %arg0, %c0_i32 : i32, i32
  }
  func.func @transform_1(%arg0: i32) -> (i32, i32) {
    %c0_i32 = arith.constant 0 : i32
    %c0_i32_0 = arith.constant 0 : i32
    %c0_i32_1 = arith.constant 0 : i32
    return %c0_i32, %c0_i32_0 : i32, i32
  }
  func.func @transform_2(%arg0: i32) -> (i32, i32) {
    %c0_i32 = arith.constant 0 : i32
    %c0_i32_0 = arith.constant 0 : i32
    %c0_i32_1 = arith.constant 0 : i32
    return %c0_i32, %c0_i32_0 : i32, i32
  }
  func.func @transform_3(%arg0: i32) -> (i32, i32, i32) {
    %c0_i32 = arith.constant 0 : i32
    %c0_i32_0 = arith.constant 0 : i32
    %c0_i32_1 = arith.constant 0 : i32
    %c0_i32_2 = arith.constant 0 : i32
    return %c0_i32, %c0_i32_0, %c0_i32_1 : i32, i32, i32
  }
  func.func @transform_4(%arg0: i32) -> (i32, i32) {
    %c0_i32 = arith.constant 0 : i32
    %c0_i32_0 = arith.constant 0 : i32
    %c0_i32_1 = arith.constant 0 : i32
    return %c0_i32, %c0_i32_0 : i32, i32
  }
  func.func @transform_5(%arg0: i32) -> (i32, i32) {
    %c0_i32 = arith.constant 0 : i32
    %c0_i32_0 = arith.constant 0 : i32
    return %arg0, %c0_i32 : i32, i32
  }
}

</mosaic_0001>

<bundles_post_ra>
// kernel: tpu_custom_call.1
= control target key start
LH: loop header
LB: loop body
LE: loop exit
PB: predicated region body
PF: predicated region fallthrough
CT: control target
= control target key end

     0   :  { %10 = vsyncpa [#allocation3], 0  ;;  %s816_s0 = inlined_call_operand.vmem [shape: bf16[64,5], index: 0, kind: input, shape index: {}]   ;;  %s817_s1 = inlined_call_operand.vmem [shape: f32[8,64], index: 1, kind: input, shape index: {}]   ;;  %s818_s2 = inlined_call_operand.vmem [shape: bf16[5,128], index: 2, kind: input, shape index: {}]   ;;  %s819_s3 = inlined_call_operand.hbm [shape: bf16[2,128,128], index: 3, kind: input, shape index: {}]   ;;  %s820_s4 = inlined_call_operand.vmem [shape: f32[2,128], index: 4, kind: input, shape index: {}]   ;;  %s821_s5 = inlined_call_operand.hbm [shape: f32[8,128], index: 5, kind: output, shape index: {}]  }
   0x1   :  { %11 = vsyncpa [#allocation4], 0  ;;  %s708_s18 = smov [#allocation2]   ;;  %s660_s22 = scalar_lea.hbm %s819_s3, 2048 }
   0x2   :  { %s23_s19 = sshll.u32 %s708_s18, 4  ;;  %p661_p0 = scmp.ne.s32.totalorder %s819_s3, %s660_s22  ;;  %s24_s19 = int_to_ptr.vmem [resolvable:$true] %s23_s19 }
   0x3   :  { %p664_p1 = scmp.lt.u32.totalorder %s660_s22, %s819_s3 }
   0x5   :  { %p666_p2 = pnand %p664_p1, %p661_p0 }
   0x7   :  { %669 = shalt.err (!%p666_p2)
}
   0x8   :  { %s670_s27 = scalar_lea.vmem %s24_s19, 2048  ;;  %p675_p4 = scmp.lt.s32.totalorder %s24_s19, %s24_s19 }
   0x9   :  { %p671_p3 = scmp.ne.s32.totalorder %s24_s19, %s670_s27  ;;  %p676_p5 = scmp.lt.s32.totalorder %s670_s27, %s670_s27 }
   0xb   :  { %p677_p6 = por %p676_p5, %p675_p4 }
   0xd   :  { %p678_p7 = pnand %p677_p6, %p671_p3 }
   0xf   :  { %681 = shalt.err (!%p678_p7)
}
  0x10   :  { %s709_s28 = smov 64   ;;  %s710_s29 = smov 4  }
  0x11   :  { %29 = dma.hbm_to_vmem [thread:$0]  %s819_s3, 2048, %s24_s19, [#allocation3], %s709_s28, %s709_s28, %s710_s29  }
  0x12   :  { %704 = dma.done.wait [#allocation3], 2048  }
  0x13   :  { %705 = vsyncadd [#allocation3], 4294965248  ;;  %vm78_vm0 = vcmask 1041408   ;;  %vm79_vm1 = vcmask 1042432   ;;  %v711_v0 = vmov 65535   ;;  %vm65_vm2 = vcmask 39936  }
  0x14   :  { %v80_v1 = vsel %vm78_vm0, 4294967295, %v711_v0  ;;  %v44_v3 = vld [vmem:[%s818_s2] sm:$0x7]  ;;  %v637_v6 = vld [vmem:[%s816_s0 + $0x8] sm:$0xff]   ;;  %v638_v7 = vld [vmem:[%s816_s0 + $0x10] sm:$0xff]   ;;  %v712_v9 = vmov 0.0|0.0  }
  0x15   :  { %v81_v2 = vsel %vm79_vm1, %v80_v1, 0  ;;  %v636_v5 = vld [vmem:[%s816_s0] sm:$0xff]   ;;  %v639_v8 = vld [vmem:[%s816_s0 + $0x18] sm:$0xff]   ;;  %616 = vmatprep.subr.bf16.mxu1 %v712_v9  ;;  %vm713_vm3 = vmmov 0   ;;  %v714_v10 = vmov 0.0   ;;  %v641_v12 = vld [vmem:[#allocation2 + $0x8] sm:$0xff]  }
  0x16   :  { %v83_v4 = vand.u32 %v81_v2, %v44_v3  ;;  %549 = vmatprep.mubr.msk.bf16.mxu0 %vm65_vm2, %v636_v5  ;;  %573 = vmatprep.mubr.msk.f32.mxu1 %vm713_vm3, %v714_v10  ;;  %v640_v11 = vld [vmem:[#allocation2] sm:$0xff]   ;;  %v642_v13 = vld [vmem:[#allocation2 + $0x10] sm:$0xff]   ;;  %v643_v14 = vld [vmem:[#allocation2 + $0x18] sm:$0xff]   ;;  %vm159_vm4 = vcmask 523264   ;;  %s715_s19 = smov [#allocation5]  }
  0x17   :  { %v644_v15 = vld [vmem:[#allocation2 + $0x20] sm:$0xff]   ;;  %v645_v16 = vld [vmem:[#allocation2 + $0x28] sm:$0xff]   ;;  %v646_v17 = vld [vmem:[#allocation2 + $0x30] sm:$0xff]   ;;  %s478_s20 = sshll.u32 %s715_s19, 4  ;;  %s479_s20 = int_to_ptr.vmem [resolvable:$true] %s478_s20 }
  0x18   :  { %547 = vmatprep.subr.bf16.mxu0 %v83_v4  ;;  %v158_v38 = vld [vmem:[%s817_s1] sm:$0xff]  ;;  %v647_v39 = vld [vmem:[#allocation2 + $0x38] sm:$0xff]   ;;  %v649_v41 = vld [vmem:[#allocation2 + $0x48] sm:$0xff]   ;;  %p687_p9 = scmp.lt.s32.totalorder %s479_s20, %s479_s20 }
  0x19   :  { %548 = vmatpush3.bf16.msra.mxu0 %v83_v4  ;;  %v648_v40 = vld [vmem:[#allocation2 + $0x40] sm:$0xff]   ;;  %v650_v42 = vld [vmem:[#allocation2 + $0x50] sm:$0xff]   ;;  %v651_v43 = vld [vmem:[#allocation2 + $0x58] sm:$0xff]   ;;  %v455_v4 = vlaneseq }
  0x1a   :  { %576 = vmatprep.subr.bf16.mxu0 %v714_v10  ;;  %v652_v44 = vld [vmem:[#allocation2 + $0x60] sm:$0xff]   ;;  %v653_v45 = vld [vmem:[#allocation2 + $0x68] sm:$0xff]   ;;  %v654_v49 = vld [vmem:[#allocation2 + $0x70] sm:$0xff]  }
  0x1b   :  { %v655_v50 = vld [vmem:[#allocation2 + $0x78] sm:$0xff]   ;;  %v496_v51 = vld [vmem:[%s820_s4] ss:$0 sm:$0xff]  ;;  %v505_v59 = vld [vmem:[%s820_s4 + $0x1] ss:$0 sm:$0xff]  ;;  %v456_v5 = vand.u32 127, %v455_v4 }
  0x1c   :  { %550 = vmatmul.mubr.msk.bf16.vlgmr.msra.gmra.mrb[0].mxu0 %vm65_vm2, %v637_v6  ;;  %s682_s4 = scalar_lea.vmem %s479_s20, 128 }
  0x1d   :  { %553 = vmatprep.mubr.msk.bf16.mxu0 %vm65_vm2, %v638_v7  ;;  %577 = vmatpush3.bf16.msra.mxu0 %v640_v11  ;;  %vm457_vm5 = vcmp.ge.s32.totalorder %v456_v5, 32  ;;  %vm458_vm6 = vcmp.lt.s32.totalorder %v456_v5, 64  ;;  %p683_p8 = scmp.ne.s32.totalorder %s479_s20, %s682_s4  ;;  %p688_p10 = scmp.lt.s32.totalorder %s682_s4, %s682_s4 }
  0x1e   :  { %578 = vmatprep.subr.bf16.mxu0 %v714_v10  ;;  %vm459_vm7 = vmand %vm457_vm5, %vm458_vm6 }
  0x1f   :  { %p689_p11 = por %p688_p10, %p687_p9 }
  0x21   :  { %579 = vmatpush3.bf16.msra.mxu0 %v641_v12  ;;  %p690_p12 = pnand %p689_p11, %p683_p8 }
  0x22   :  { %580 = vmatprep.subr.bf16.mxu0 %v714_v10 }
  0x24   :  { %554 = vmatmul.mubr.msk.bf16.gmra.mrb[4].mxu0 %vm65_vm2, %v639_v8 }
  0x25   :  { %592 = vmatprep.mubr.msk.bf16.mxu0 %vm713_vm3, %v714_v10  ;;  %581 = vmatpush3.bf16.msra.mxu0 %v642_v13 }
  0x26   :  { %582 = vmatprep.subr.bf16.mxu0 %v714_v10 }
  0x29   :  { %583 = vmatpush3.bf16.msra.mxu0 %v643_v14 }
  0x2a   :  { %584 = vmatprep.subr.bf16.mxu0 %v714_v10 }
  0x2d   :  { %585 = vmatpush3.bf16.msra.mxu0 %v644_v15 }
  0x2e   :  { %586 = vmatprep.subr.bf16.mxu0 %v714_v10 }
  0x31   :  { %587 = vmatpush3.bf16.msra.mxu0 %v645_v16 }
  0x32   :  { %588 = vmatprep.subr.bf16.mxu0 %v714_v10 }
  0x35   :  { %589 = vmatpush3.bf16.msra.mxu0 %v646_v17 }
  0x36   :  { %590 = vmatprep.subr.bf16.mxu0 %v714_v10 }
  0x39   :  { %591 = vmatpush3.bf16.msra.mxu0 %v647_v39 }
  0xef   :  { %v551_v18 = vpop.f32.mrb[0].mxu0 }
  0xf0   :  { %v119_v19 = vpop.f32.mrb[1].mxu0  ;;  %v152_v21 = vmax.f32 %v551_v18, 0.0 }
  0xf1   :  { %v552_v20 = vpop.f32.mrb[2].mxu0  ;;  %v150_v24 = vmax.f32 %v119_v19, 0.0 }
  0xf2   :  { %v153_v22 = vmax.f32 %v552_v20, 0.0  ;;  %v122_v23 = vpop.f32.mrb[3].mxu0 }
  0xf3   :  { %v151_v25 = vmax.f32 %v122_v23, 0.0 }
  0xf4   :  { %v620_v26 = vpack.c.bf16 %v153_v22, %v152_v21 }
  0xf5   :  { %v617_v27 = vpack.c.bf16 %v151_v25, %v150_v24 }
  0xf7   :  { %v555_v28 = vpop.f32.mrb[4].mxu0  ;;  %618 = vmatpush3.bf16.msra.mxu1 %v617_v27 }
  0xf8   :  { %v135_v29 = vpop.f32.mrb[5].mxu0  ;;  %619 = vmatprep.subr.bf16.mxu1 %v712_v9  ;;  %v156_v31 = vmax.f32 %v555_v28, 0.0 }
  0xf9   :  { %v556_v30 = vpop.f32.mrb[6].mxu0  ;;  %v154_v34 = vmax.f32 %v135_v29, 0.0 }
  0xfa   :  { %v157_v32 = vmax.f32 %v556_v30, 0.0  ;;  %v138_v33 = vpop.f32.mrb[7].mxu0 }
  0xfb   :  { %v155_v35 = vmax.f32 %v138_v33, 0.0  ;;  %621 = vmatpush3.bf16.msra.mxu1 %v620_v26 }
  0xfc   :  { %v626_v36 = vpack.c.bf16 %v157_v32, %v156_v31  ;;  %622 = vmatprep.subr.bf16.mxu1 %v712_v9 }
  0xfd   :  { %v623_v37 = vpack.c.bf16 %v155_v35, %v154_v34 }
  0xff   :  { %624 = vmatpush3.bf16.msra.mxu1 %v623_v37 }
 0x100   :  { %625 = vmatprep.subr.bf16.mxu1 %v712_v9 }
 0x103   :  { %627 = vmatpush3.bf16.msra.mxu1 %v626_v36 }
 0x104   :  { %596 = vmatprep.subr.bf16.mxu1 %v714_v10 }
 0x106   :  { %574 = vmatmul.mubr.msk.f32.vlgmr.msra.gmra.mrb[0].mxu1 %vm159_vm4, %v158_v38 }
 0x107   :  { %612 = vmatprep.mubr.msk.bf16.mxu1 %vm713_vm3, %v714_v10  ;;  %597 = vmatpush3.bf16.msra.mxu1 %v648_v40 }
 0x108   :  { %598 = vmatprep.subr.bf16.mxu1 %v714_v10 }
 0x10b   :  { %599 = vmatpush3.bf16.msra.mxu1 %v649_v41 }
 0x10c   :  { %600 = vmatprep.subr.bf16.mxu1 %v714_v10 }
 0x10f   :  { %601 = vmatpush3.bf16.msra.mxu1 %v650_v42 }
 0x110   :  { %602 = vmatprep.subr.bf16.mxu1 %v714_v10 }
 0x113   :  { %603 = vmatpush3.bf16.msra.mxu1 %v651_v43 }
 0x114   :  { %604 = vmatprep.subr.bf16.mxu1 %v714_v10 }
 0x117   :  { %605 = vmatpush3.bf16.msra.mxu1 %v652_v44 }
 0x118   :  { %606 = vmatprep.subr.bf16.mxu1 %v714_v10 }
 0x11b   :  { %607 = vmatpush3.bf16.msra.mxu1 %v653_v45 }
 0x11c   :  { %608 = vmatprep.subr.bf16.mxu1 %v714_v10 }
 0x11f   :  { %609 = vmatpush3.bf16.msra.mxu1 %v654_v49 }
 0x120   :  { %610 = vmatprep.subr.bf16.mxu1 %v714_v10 }
 0x123   :  { %611 = vmatpush3.bf16.msra.mxu1 %v655_v50 }
 0x1d9   :  { %v229_v46 = vpop.f32.mrb[0].mxu1 }
 0x1da   :  { %v233_v47 = vpack.c.bf16 %v229_v46, %v229_v46  ;;  %v575_v48 = vpop.f32.mrb[1].mxu1 }
 0x1dc   :  { %593 = vmatmul.mubr.bf16.vlgmr.msra.gmra.mrb[8].mxu0 %v233_v47 }
 0x2af   :  { %v337_v52 = vpop.f32.mrb[8].mxu0 }
 0x2b0   :  { %v338_v53 = vadd.f32 %v496_v51, %v337_v52  ;;  %v594_v54 = vpop.f32.mrb[9].mxu0 }
 0x2b1   :  { %v340_v55 = vpop.f32.mrb[10].mxu0 }
 0x2b2   :  { %v343_v56 = vmax.f32 %v338_v53, 0.0  ;;  %v595_v57 = vpop.f32.mrb[11].mxu0 }
 0x2b4   :  { %v344_v58 = vpack.c.bf16 %v343_v56, %v343_v56 }
 0x2b6   :  { %613 = vmatmul.mubr.bf16.vlgmr.msra.gmra.mrb[4].mxu1 %v344_v58 }
 0x389   :  { %v449_v60 = vpop.f32.mrb[4].mxu1 }
 0x38a   :  { %v450_v61 = vadd.f32 %v505_v59, %v449_v60  ;;  %v614_v62 = vpop.f32.mrb[5].mxu1 }
 0x38b   :  { %v452_v63 = vpop.f32.mrb[6].mxu1 }
 0x38c   :  { %v514_v0 = vmul.f32 -1.442695, %v450_v61  ;;  %v615_v1 = vpop.f32.mrb[7].mxu1 }
 0x38e   :  { %656 = vpow2.f32 %v514_v0 }
 0x398   :  { %v657_v2 = vpop.eup %656 }
 0x399   :  { %v463_v3 = vadd.f32 1.0, %v657_v2 }
 0x39b   :  { %658 = vrcp.f32 %v463_v3 }
 0x3a5   :  { %v659_v6 = vpop.eup %658 }
 0x3a6   :  { %v466_v7 = vmul.f32 0.9, %v659_v6 }
 0x3a8   :  { %v467_v8 = vadd.f32 0.1, %v466_v7 }
 0x3aa   :  { %v470_v9 = vsel %vm459_vm7, %v467_v8, %v450_v61 }
 0x3ab   :  { %471 = vst [vmem:[#allocation5] sm:$0xff] %v470_v9 }
 0x3ac   :  { %693 = shalt.err (!%p690_p12)
}
 0x3ad   :  { %s694_s23 = scalar_lea.hbm %s821_s5, 128 }
 0x3ae   :  { %p695_p13 = scmp.ne.s32.totalorder %s821_s5, %s694_s23  ;;  %p698_p0 = scmp.lt.u32.totalorder %s694_s23, %s821_s5 }
 0x3b0   :  { %p700_p1 = pnand %p698_p0, %p695_p13 }
 0x3b2   :  { %703 = shalt.err (!%p700_p1)
}
 0x3b3   :  { %481 = dma.vmem_to_hbm [thread:$0]  %s479_s20, 128, %s821_s5, [#allocation4]  }
 0x3b4   :  { %706 = dma.done.wait [#allocation4], 128  }
 0x3b5   :  { %707 = vsyncadd [#allocation4], 4294967168 }
 0x3b6   :  { %485 = vsyncpa [#allocation3], 1 }
 0x3b7   :  { %486 = vsyncpa [#allocation4], 1 }

</bundles_post_ra>
